<compile_context>
chip_gen: v7x
topology: tpu7x:2x2x1
jax: 0.10.0
libtpu: 0.0.40
codegen_flags: <defaults>
</compile_context>

<pallas_src>
import jax
import jax.numpy as jnp
from jax.experimental import pallas as pl
from jax.experimental.pallas import tpu as pltpu

LANE = 128  # TPU lane width (last-dim vreg extent)


def _bifurcation_kernel(p_ref, x_ref, out_ref):
    """p_ref: SMEM (8,) packed [w, b, wl, bl, wr, br, w2, b2]
    x_ref:  VMEM (tile_rows, 128) lane-dense parent features
    out_ref: VMEM (tile_rows, 384) fused [left | right | rad] slab
    """
    w, b = p_ref[0], p_ref[1]
    wl, bl = p_ref[2], p_ref[3]
    wr, br = p_ref[4], p_ref[5]
    w2, b2 = p_ref[6], p_ref[7]

    x = x_ref[...]                                   # (tile_rows, 128) f32

    # vector = tanh(mlp(parent))  -- pure VPU + EUP, no MXU
    v = jnp.tanh(x * w + b)

    # left_feature = tanh(mlp_left(vector))
    out_ref[:, 0:LANE] = jnp.tanh(v * wl + bl)
    # right_feature = tanh(mlp_right(vector))
    out_ref[:, LANE:2 * LANE] = jnp.tanh(v * wr + br)
    # rad_feature = mlp2(vector)   (no tanh)
    out_ref[:, 2 * LANE:3 * LANE] = v * w2 + b2


def bifurcation_decoder(parent_feature, params, max_tile_rows=512):
    """parent_feature: (B, 1) float32. params: dict of (1,1) weights/biases.

    Returns (left, right, rad), each (B, 1) float32.
    """
    B, F = parent_feature.shape
    assert F == 1, "BifurcationDecoder uses Linear(1, 1); feature dim must be 1."

    # ---- pack the eight scalar params into one SMEM-resident array ----------
    p_packed = jnp.concatenate(
        [params[k].reshape(-1).astype(jnp.float32)
         for k in ("w", "b", "wl", "bl", "wr", "br", "w2", "b2")]
    )  # (8,)

    # ---- lane-dense reshape: (B, 1) -> (rows, 128), padded ------------------
    x_flat = parent_feature.reshape(-1).astype(jnp.float32)
    rows_needed = max(1, pl.cdiv(B, LANE))
    rows_8 = ((rows_needed + 7) // 8) * 8           # sublane-align
    tile_rows = min(max_tile_rows, rows_8)
    n_tiles = pl.cdiv(rows_8, tile_rows)
    rows = n_tiles * tile_rows
    padded = rows * LANE
    x2d = jnp.pad(x_flat, (0, padded - B)).reshape(rows, LANE)

    out = pl.pallas_call(
        _bifurcation_kernel,
        out_shape=jax.ShapeDtypeStruct((rows, 3 * LANE), jnp.float32),
        grid=(n_tiles,),
        in_specs=[
            pl.BlockSpec(memory_space=pltpu.MemorySpace.SMEM),          # params
            pl.BlockSpec((tile_rows, LANE), lambda i: (i, 0)),          # x
        ],
        out_specs=pl.BlockSpec((tile_rows, 3 * LANE), lambda i: (i, 0)),
        compiler_params=pltpu.CompilerParams(
            dimension_semantics=("parallel",)),
    )(p_packed, x2d)

    # ---- split fused slab and drop padding ----------------------------------
    left = out[:, 0:LANE].reshape(-1)[:B].reshape(B, 1)
    right = out[:, LANE:2 * LANE].reshape(-1)[:B].reshape(B, 1)
    rad = out[:, 2 * LANE:3 * LANE].reshape(-1)[:B].reshape(B, 1)
    return left, right, rad


def _init_params(key):
    """Deterministic synthetic init (shapes match nn.Linear(1, 1))."""
    keys = jax.random.split(key, 8)
    names = ["w", "b", "wl", "bl", "wr", "br", "w2", "b2"]
    params = {}
    for name, k in zip(names, keys):
        params[name] = jax.random.uniform(
            k, (1, 1), dtype=jnp.float32, minval=-1.0, maxval=1.0
        )
    return params


def _reference(parent_feature, p):
    """Pure-JAX reference of the PyTorch forward."""
    v = jnp.tanh(parent_feature @ p["w"].T + p["b"])
    left = jnp.tanh(v @ p["wl"].T + p["bl"])
    right = jnp.tanh(v @ p["wr"].T + p["br"])
    rad = v @ p["w2"].T + p["b2"]
    return left, right, rad


if __name__ == "__main__":
    key = jax.random.PRNGKey(0)
    k_params, k_x = jax.random.split(key)

    params = _init_params(k_params)
    # Small batch of parent features, shape (B, 1)
    parent = jax.random.normal(k_x, (8, 1), dtype=jnp.float32)

    left, right, rad = bifurcation_decoder(parent, params)
    jax.block_until_ready((left, right, rad))

    # Correctness check against pure-JAX reference
    ref_left, ref_right, ref_rad = _reference(parent, params)
    assert jnp.allclose(left, ref_left, atol=1e-5), "left mismatch"
    assert jnp.allclose(right, ref_right, atol=1e-5), "right mismatch"
    assert jnp.allclose(rad, ref_rad, atol=1e-5), "rad mismatch"

    # Also exercise a larger, non-multiple-of-128 batch to hit the tiled path.
    parent_big = jax.random.normal(jax.random.PRNGKey(1), (1000, 1), jnp.float32)
    lb, rb, db = bifurcation_decoder(parent_big, params)
    rl, rr, rd = _reference(parent_big, params)
    assert jnp.allclose(lb, rl, atol=1e-5), "left mismatch (big)"
    assert jnp.allclose(rb, rr, atol=1e-5), "right mismatch (big)"
    assert jnp.allclose(db, rd, atol=1e-5), "rad mismatch (big)"

    print("KERNEL_OK")
</pallas_src>

<mosaic_0001>
module attributes {stable_mosaic.version = 11 : i64} {
  func.func @_bifurcation_kernel(%arg0: i32, %arg1: memref<8xf32, #tpu.memory_space<smem>>, %arg2: memref<8x128xf32, #tpu.memory_space<vmem>>, %arg3: memref<8x384xf32, #tpu.memory_space<vmem>>) attributes {dimension_semantics = [#tpu.dimension_semantics<parallel>], iteration_bounds = array<i64: 1>, scalar_prefetch = 0 : i64, scratch_operands = 0 : i64, tpu.core_type = #tpu.core_type<tc>, window_params = [{transform_indices = @transform_0, window_bounds = array<i64: 8>}, {transform_indices = @transform_1, window_bounds = array<i64: 8, 128>}, {transform_indices = @transform_2, window_bounds = array<i64: 8, 384>}]} {
    %c0 = arith.constant 0 : index
    %0 = memref.load %arg1[%c0] : memref<8xf32, #tpu.memory_space<smem>>
    %c1 = arith.constant 1 : index
    %1 = memref.load %arg1[%c1] : memref<8xf32, #tpu.memory_space<smem>>
    %c2 = arith.constant 2 : index
    %2 = memref.load %arg1[%c2] : memref<8xf32, #tpu.memory_space<smem>>
    %c3 = arith.constant 3 : index
    %3 = memref.load %arg1[%c3] : memref<8xf32, #tpu.memory_space<smem>>
    %c4 = arith.constant 4 : index
    %4 = memref.load %arg1[%c4] : memref<8xf32, #tpu.memory_space<smem>>
    %c5 = arith.constant 5 : index
    %5 = memref.load %arg1[%c5] : memref<8xf32, #tpu.memory_space<smem>>
    %c6 = arith.constant 6 : index
    %6 = memref.load %arg1[%c6] : memref<8xf32, #tpu.memory_space<smem>>
    %c7 = arith.constant 7 : index
    %7 = memref.load %arg1[%c7] : memref<8xf32, #tpu.memory_space<smem>>
    %c0_0 = arith.constant 0 : index
    %c0_1 = arith.constant 0 : index
    %8 = vector.load %arg2[%c0_0, %c0_1] : memref<8x128xf32, #tpu.memory_space<vmem>>, vector<8x128xf32>
    %9 = vector.broadcast %0 : f32 to vector<8x128xf32>
    %10 = arith.mulf %8, %9 : vector<8x128xf32>
    %11 = vector.broadcast %1 : f32 to vector<8x128xf32>
    %12 = arith.addf %10, %11 : vector<8x128xf32>
    %13 = math.tanh %12 : vector<8x128xf32>
    %14 = vector.broadcast %2 : f32 to vector<8x128xf32>
    %15 = arith.mulf %13, %14 : vector<8x128xf32>
    %16 = vector.broadcast %3 : f32 to vector<8x128xf32>
    %17 = arith.addf %15, %16 : vector<8x128xf32>
    %18 = math.tanh %17 : vector<8x128xf32>
    %c0_2 = arith.constant 0 : index
    %c0_3 = arith.constant 0 : index
    %19 = vector.load %arg3[%c0_2, %c0_3] : memref<8x384xf32, #tpu.memory_space<vmem>>, vector<8x128xf32>
    tpu.vector_store %arg3[%c0_2, %c0_3], %18 {strides = array<i32>} : memref<8x384xf32, #tpu.memory_space<vmem>>, vector<8x128xf32>,
    %20 = vector.broadcast %4 : f32 to vector<8x128xf32>
    %21 = arith.mulf %13, %20 : vector<8x128xf32>
    %22 = vector.broadcast %5 : f32 to vector<8x128xf32>
    %23 = arith.addf %21, %22 : vector<8x128xf32>
    %24 = math.tanh %23 : vector<8x128xf32>
    %c0_4 = arith.constant 0 : index
    %c128 = arith.constant 128 : index
    %25 = vector.load %arg3[%c0_4, %c128] : memref<8x384xf32, #tpu.memory_space<vmem>>, vector<8x128xf32>
    tpu.vector_store %arg3[%c0_4, %c128], %24 {strides = array<i32>} : memref<8x384xf32, #tpu.memory_space<vmem>>, vector<8x128xf32>,
    %26 = vector.broadcast %6 : f32 to vector<8x128xf32>
    %27 = arith.mulf %13, %26 : vector<8x128xf32>
    %28 = vector.broadcast %7 : f32 to vector<8x128xf32>
    %29 = arith.addf %27, %28 : vector<8x128xf32>
    %c0_5 = arith.constant 0 : index
    %c256 = arith.constant 256 : index
    %30 = vector.load %arg3[%c0_5, %c256] : memref<8x384xf32, #tpu.memory_space<vmem>>, vector<8x128xf32>
    tpu.vector_store %arg3[%c0_5, %c256], %29 {strides = array<i32>} : memref<8x384xf32, #tpu.memory_space<vmem>>, vector<8x128xf32>,
    return
  }
  func.func @transform_0(%arg0: i32) -> i32 {
    %c0_i32 = arith.constant 0 : i32
    %c0_i32_0 = arith.constant 0 : i32
    return %c0_i32 : i32
  }
  func.func @transform_1(%arg0: i32) -> (i32, i32) {
    %c0_i32 = arith.constant 0 : i32
    %c0_i32_0 = arith.constant 0 : i32
    return %arg0, %c0_i32 : i32, i32
  }
  func.func @transform_2(%arg0: i32) -> (i32, i32) {
    %c0_i32 = arith.constant 0 : i32
    %c0_i32_0 = arith.constant 0 : i32
    return %arg0, %c0_i32 : i32, i32
  }
}

</mosaic_0001>

<bundles_post_ra>
// kernel: tpu_custom_call.1
= control target key start
LH: loop header
LB: loop body
LE: loop exit
PB: predicated region body
PF: predicated region fallthrough
CT: control target
= control target key end

     0   :  { %7 = vsyncpa [#allocation5], 0  ;;  %s212_s0 = inlined_call_operand.hbm [shape: f32[8], index: 0, kind: input, shape index: {}]   ;;  %s213_s1 = inlined_call_operand.hbm [shape: f32[8,128], index: 1, kind: input, shape index: {}]   ;;  %s214_s2 = inlined_call_operand.hbm [shape: f32[8,384], index: 2, kind: output, shape index: {}]  }
   0x1   :  { %8 = vsyncpa [#allocation3], 0 }
   0x2   :  { %9 = vsyncpa [#allocation4], 0  ;;  %s98_s11 = scalar_lea.hbm %s212_s0, 16 }
   0x3   :  { %p99_p0 = scmp.ne.s32.totalorder %s212_s0, %s98_s11  ;;  %p102_p1 = scmp.lt.u32.totalorder %s98_s11, %s212_s0 }
   0x5   :  { %p104_p2 = pnand %p102_p1, %p99_p0 }
   0x7   :  { %107 = shalt.err (!%p104_p2)
}
   0x8   :  { %s158_s16 = smov [#allocation2]   ;;  %s159_s19 = smov [#allocation6]  }
   0x9   :  { %17 = dma.hbm_to_smem %s212_s0, 16, %s158_s16, [#allocation5]  }
   0xa   :  { %s24_s20 = sshll.u32 %s159_s19, 4  ;;  %s108_s23 = scalar_lea.hbm %s213_s1, 128  ;;  %s25_s20 = int_to_ptr.vmem [resolvable:$true] %s24_s20 }
   0xb   :  { %p109_p3 = scmp.ne.s32.totalorder %s213_s1, %s108_s23  ;;  %p112_p4 = scmp.lt.u32.totalorder %s108_s23, %s213_s1 }
   0xd   :  { %p114_p5 = pnand %p112_p4, %p109_p3 }
   0xf   :  { %117 = shalt.err (!%p114_p5)
}
  0x10   :  { %s118_s28 = scalar_lea.vmem %s25_s20, 128  ;;  %p123_p7 = scmp.lt.s32.totalorder %s25_s20, %s25_s20 }
  0x11   :  { %p119_p6 = scmp.ne.s32.totalorder %s25_s20, %s118_s28  ;;  %p124_p8 = scmp.lt.s32.totalorder %s118_s28, %s118_s28 }
  0x13   :  { %p125_p9 = por %p124_p8, %p123_p7 }
  0x15   :  { %p126_p10 = pnand %p125_p9, %p119_p6 }
  0x17   :  { %129 = shalt.err (!%p126_p10)
}
  0x18   :  { %27 = dma.hbm_to_vmem [thread:$0]  %s213_s1, 128, %s25_s20, [#allocation3]  }
  0x19   :  { %152 = dma.done.wait [#allocation5], 16  }
  0x1a   :  { %153 = vsyncadd [#allocation5], 4294967280 }
  0x1b   :  { %154 = dma.done.wait [#allocation3], 128  }
  0x1c   :  { %155 = vsyncadd [#allocation3], 4294967168 }
  0x1d   :  { %34 = sfence }
  0x1e   :  { %s35_s30 = sld [smem:[#allocation2]]  ;;  %s82_s3 = sld [smem:[#allocation2 + $0x1]]  ;;  %v43_v0 = vld [vmem:[#allocation6] sm:$0xff] }
  0x1f   :  { %s83_s4 = sld [smem:[#allocation2 + $0x2]]  ;;  %s85_s5 = sld [smem:[#allocation2 + $0x4]] }
  0x20   :  { %s87_s6 = sld [smem:[#allocation2 + $0x6]]  ;;  %s84_s7 = sld [smem:[#allocation2 + $0x3]] }
  0x21   :  { %s86_s8 = sld [smem:[#allocation2 + $0x5]]  ;;  %s88_s9 = sld [smem:[#allocation2 + $0x7]] }
  0x22   :  { %s160_s1 = smov [#allocation7]  }
  0x23   :  { %s72_s10 = sshll.u32 %s160_s1, 4  ;;  %s73_s10 = int_to_ptr.vmem [resolvable:$true] %s72_s10 }
  0x24   :  { %v44_v1 = vstv %s35_s30  ;;  %v46_v2 = vstv %s82_s3  ;;  %s130_s11 = scalar_lea.vmem %s73_s10, 384  ;;  %p135_p12 = scmp.lt.s32.totalorder %s73_s10, %s73_s10 }
  0x25   :  { %v45_v3 = vmul.f32 %v44_v1, %v43_v0  ;;  %v49_v5 = vstv %s83_s4  ;;  %v55_v6 = vstv %s85_s5  ;;  %p131_p11 = scmp.ne.s32.totalorder %s73_s10, %s130_s11  ;;  %p136_p13 = scmp.lt.s32.totalorder %s130_s11, %s130_s11 }
  0x26   :  { %v61_v7 = vstv %s87_s6  ;;  %v51_v9 = vstv %s84_s7 }
  0x27   :  { %v47_v4 = vadd.f32 %v46_v2, %v45_v3  ;;  %v57_v10 = vstv %s86_s8  ;;  %v63_v11 = vstv %s88_s9  ;;  %p137_p0 = por %p136_p13, %p135_p12 }
  0x29   :  { %92 = vtanh.f32 %v47_v4  ;;  %p138_p1 = pnand %p137_p0, %p131_p11 }
  0x33   :  { %v93_v8 = vpop.eup %92 }
  0x34   :  { %v50_v12 = vmul.f32 %v93_v8, %v49_v5  ;;  %v56_v13 = vmul.f32 %v93_v8, %v55_v6  ;;  %v62_v14 = vmul.f32 %v93_v8, %v61_v7 }
  0x36   :  { %v52_v15 = vadd.f32 %v51_v9, %v50_v12  ;;  %v58_v16 = vadd.f32 %v57_v10, %v56_v13  ;;  %v64_v17 = vadd.f32 %v63_v11, %v62_v14 }
  0x38   :  { %94 = vtanh.f32 %v52_v15  ;;  %65 = vst [vmem:[#allocation7 + $0x10] sm:$0xff] %v64_v17 }
  0x39   :  { %96 = vtanh.f32 %v58_v16 }
  0x42   :  { %v95_v18 = vpop.eup %94 }
  0x43   :  { %v97_v19 = vpop.eup %96  ;;  %54 = vst [vmem:[#allocation7] sm:$0xff] %v95_v18 }
  0x44   :  { %60 = vst [vmem:[#allocation7 + $0x8] sm:$0xff] %v97_v19 }
  0x45   :  { %141 = shalt.err (!%p138_p1)
}
  0x46   :  { %s142_s14 = scalar_lea.hbm %s214_s2, 384 }
  0x47   :  { %p143_p2 = scmp.ne.s32.totalorder %s214_s2, %s142_s14  ;;  %p146_p3 = scmp.lt.u32.totalorder %s142_s14, %s214_s2 }
  0x49   :  { %p148_p4 = pnand %p146_p3, %p143_p2 }
  0x4b   :  { %151 = shalt.err (!%p148_p4)
}
  0x4c   :  { %75 = dma.vmem_to_hbm [thread:$0]  %s73_s10, 384, %s214_s2, [#allocation4]  }
  0x4d   :  { %156 = dma.done.wait [#allocation4], 384  }
  0x4e   :  { %157 = vsyncadd [#allocation4], 4294966912 }
  0x4f   :  { %79 = vsyncpa [#allocation3], 1 }
  0x50   :  { %80 = vsyncpa [#allocation4], 1 }
  0x51   :  { %81 = vsyncpa [#allocation5], 1 }

</bundles_post_ra>
